<compile_context>
chip_gen: v6e
topology: v6e:2x2x1
jax: 0.10.0
libtpu: 0.0.40
codegen_flags: <defaults>
</compile_context>

<pallas_src>
import jax
import jax.numpy as jnp
from jax.experimental import pallas as pl
from jax.experimental.pallas import tpu as pltpu  # noqa: F401  (kept for TPU-specific tuning hooks)

_ENG_PAD = 128  # lane width of the padded energy block appended to the output slab


def _fused_energy_kernel(z_ref, w_ref, b_ref, out_ref):
    # One MXU push + VPU bias add; single lane-dense store of (B, N + 128).
    out_ref[...] = (
        jnp.dot(z_ref[...], w_ref[...], preferred_element_type=jnp.float32)
        + b_ref[...]
    ).astype(out_ref.dtype)


def energy_forward(z, v, params, dx):
    """Pallas implementation of Energy.forward for dimension='1D'.

    Returns (energy, x) with energy.shape == (B,), x.shape == (B, N).
    """
    # TODO(synk): '2D'/'3D' dimensions reduce to the same contraction after
    # flattening the spatial axes of v and x; only the '1D' path is wired up.
    B, H = z.shape
    N = params["wx"].shape[1]
    dx_f = jnp.float32(dx)

    wx = params["wx"].astype(jnp.float32)              # (H, N)
    bx = params["bx"].reshape(N).astype(jnp.float32)   # (N,)
    we = params["we"].reshape(H).astype(jnp.float32)   # (H,)
    be = params["be"].reshape(()).astype(jnp.float32)  # ()
    v = v.astype(jnp.float32)                          # (N,)

    # Fused energy head (wrapper-side precompute, tiny matvecs):
    #   eng = z @ we + be + dx * (z @ wx + bx) @ v
    #       = z @ (we + dx * wx @ v) + (be + dx * bx @ v)
    w_eng = we + dx_f * (wx @ v)                       # (H,)
    b_eng = be + dx_f * jnp.dot(bx, v)                 # ()

    # Pack into one weight / one bias so the kernel does a single matmul and a
    # single lane-dense output store. The eng column lives at lane N of the
    # padded 128-lane block (remaining padded lanes are zero).
    w_pad = jnp.zeros((H, _ENG_PAD), jnp.float32).at[:, 0].set(w_eng)
    b_pad = jnp.zeros((_ENG_PAD,), jnp.float32).at[0].set(b_eng)
    w_cat = jnp.concatenate([wx, w_pad], axis=1)                  # (H, N + 128)
    b_cat = jnp.concatenate([bx, b_pad]).reshape(1, N + _ENG_PAD)  # (1, N + 128)

    P = N + _ENG_PAD
    cost = pl.CostEstimate(
        flops=2 * B * H * P + B * P,
        transcendentals=0,
        bytes_accessed=4 * (B * H + H * P + P + B * P),
    )

    # Toy sizes fit in a single grid point / VMEM tile; at production B/N a
    # ("parallel", ...) grid over B (and N) would be added to use both v7x TCs.
    out = pl.pallas_call(
        _fused_energy_kernel,
        out_shape=jax.ShapeDtypeStruct((B, P), jnp.float32),
        in_specs=[
            pl.BlockSpec((B, H), lambda: (0, 0)),
            pl.BlockSpec((H, P), lambda: (0, 0)),
            pl.BlockSpec((1, P), lambda: (0, 0)),
        ],
        out_specs=pl.BlockSpec((B, P), lambda: (0, 0)),
        cost_estimate=cost,
    )(z.astype(jnp.float32), w_cat, b_cat)

    x = out[:, :N]     # density field
    eng = out[:, N]    # fused (eng_1 + eng_2), first lane of the padded block
    return eng, x


def _reference(z, v, params, dx):
    x = z @ params["wx"] + params["bx"]
    eng1 = (z @ params["we"]).reshape(-1) + params["be"].reshape(())
    eng2 = jnp.einsum("ai,i->a", x, v) * dx
    return eng1 + eng2, x


if __name__ == "__main__":
    B, H, N = 8, 32, 128
    dx = 0.05

    key = jax.random.PRNGKey(0)
    kz, kv, kwx, kbx, kwe, kbe = jax.random.split(key, 6)

    z = jax.random.normal(kz, (B, H), dtype=jnp.float32)
    v = jax.random.normal(kv, (N,), dtype=jnp.float32)

    # Deterministic synthetic parameters for the wrapped model.
    params = {
        "wx": jax.random.normal(kwx, (H, N), dtype=jnp.float32) * 0.1,
        "bx": jax.random.normal(kbx, (N,), dtype=jnp.float32) * 0.1,
        "we": jax.random.normal(kwe, (H, 1), dtype=jnp.float32) * 0.1,
        "be": jax.random.normal(kbe, (1,), dtype=jnp.float32) * 0.1,
    }

    energy, x = energy_forward(z, v, params, dx)
    jax.block_until_ready((energy, x))

    ref_energy, ref_x = _reference(z, v, params, dx)
    assert jnp.allclose(energy, ref_energy, atol=1e-4, rtol=1e-4)
    assert jnp.allclose(x, ref_x, atol=1e-4, rtol=1e-4)
    assert energy.shape == (B,) and x.shape == (B, N)

    print("KERNEL_OK")
</pallas_src>

<mosaic_0001>
module attributes {stable_mosaic.version = 11 : i64} {
  func.func @_fused_energy_kernel(%arg0: memref<8x32xf32, #tpu.memory_space<vmem>>, %arg1: memref<32x256xf32, #tpu.memory_space<vmem>>, %arg2: memref<1x256xf32, #tpu.memory_space<vmem>>, %arg3: memref<8x256xf32, #tpu.memory_space<vmem>>) attributes {dimension_semantics = [], scalar_prefetch = 0 : i64, scratch_operands = 0 : i64, tpu.core_type = #tpu.core_type<tc>} {
    %c0 = arith.constant 0 : index
    %c0_0 = arith.constant 0 : index
    %0 = vector.load %arg0[%c0, %c0_0] : memref<8x32xf32, #tpu.memory_space<vmem>>, vector<8x32xf32>
    %c0_1 = arith.constant 0 : index
    %c0_2 = arith.constant 0 : index
    %1 = vector.load %arg1[%c0_1, %c0_2] : memref<32x256xf32, #tpu.memory_space<vmem>>, vector<32x256xf32>
    %cst = arith.constant dense<0.000000e+00> : vector<8x256xf32>
    %2 = tpu.matmul %0, %1, %cst {dimension_numbers = #tpu.dot_dimension_numbers<[1], [0], [0], [1], [0, 0, 1, 1], [], []>} : vector<8x32xf32>, vector<32x256xf32>, vector<8x256xf32> -> vector<8x256xf32>
    %c0_3 = arith.constant 0 : index
    %c0_4 = arith.constant 0 : index
    %3 = vector.load %arg2[%c0_3, %c0_4] : memref<1x256xf32, #tpu.memory_space<vmem>>, vector<1x256xf32>
    %4 = vector.broadcast %3 : vector<1x256xf32> to vector<8x256xf32>
    %5 = arith.addf %2, %4 : vector<8x256xf32>
    %c0_5 = arith.constant 0 : index
    %c0_6 = arith.constant 0 : index
    %6 = vector.load %arg3[%c0_5, %c0_6] : memref<8x256xf32, #tpu.memory_space<vmem>>, vector<8x256xf32>
    tpu.vector_store %arg3[%c0_5, %c0_6], %5 {strides = array<i32>} : memref<8x256xf32, #tpu.memory_space<vmem>>, vector<8x256xf32>,
    return
  }
}

</mosaic_0001>

<bundles_post_ra>
// kernel: tpu_custom_call.1
= control target key start
LH: loop header
LB: loop body
LE: loop exit
PB: predicated region body
PF: predicated region fallthrough
CT: control target
= control target key end

     0   :  { %8 = vsyncpa [#allocation3], 0  ;;  %s266_s0 = inlined_call_operand.hbm [shape: f32[8,32], index: 0, kind: input, shape index: {}]   ;;  %s267_s1 = inlined_call_operand.hbm [shape: f32[32,256], index: 1, kind: input, shape index: {}]   ;;  %s268_s2 = inlined_call_operand.vmem [shape: f32[1,256], index: 2, kind: input, shape index: {}]   ;;  %s269_s3 = inlined_call_operand.hbm [shape: f32[8,256], index: 3, kind: output, shape index: {}]  }
   0x1   :  { %9 = vsyncpa [#allocation6], 0 }
   0x2   :  { %10 = vsyncpa [#allocation4], 0  ;;  %s228_s12 = smov [#allocation2]   ;;  %s229_s14 = smov [#allocation5]  }
   0x3   :  { %s17_s13 = sshll.u32 %s228_s12, 4  ;;  %s26_s15 = sshll.u32 %s229_s14, 4  ;;  %s18_s13 = int_to_ptr.vmem [resolvable:$true] %s17_s13  ;;  %s27_s15 = int_to_ptr.vmem [resolvable:$true] %s26_s15 }
   0x4   :  { %s170_s16 = scalar_lea.vmem %s18_s13, 128  ;;  %p175_p1 = scmp.lt.s32.totalorder %s18_s13, %s18_s13 }
   0x5   :  { %p171_p0 = scmp.ne.s32.totalorder %s18_s13, %s170_s16  ;;  %p176_p2 = scmp.lt.s32.totalorder %s170_s16, %s170_s16 }
   0x7   :  { %p177_p3 = por %p176_p2, %p175_p1 }
   0x9   :  { %p178_p4 = pnand %p177_p3, %p171_p0 }
   0xb   :  { %181 = shalt.err (!%p178_p4)
}
   0xc   :  { %20 = dma.hbm_to_vmem [thread:$0]  %s266_s0, 128, %s18_s13, [#allocation3]  }
   0xd   :  { %s190_s19 = scalar_lea.vmem %s27_s15, 1024  ;;  %p195_p6 = scmp.lt.s32.totalorder %s27_s15, %s27_s15 }
   0xe   :  { %p191_p5 = scmp.ne.s32.totalorder %s27_s15, %s190_s19  ;;  %p196_p7 = scmp.lt.s32.totalorder %s190_s19, %s190_s19 }
  0x10   :  { %p197_p8 = por %p196_p7, %p195_p6 }
  0x12   :  { %p198_p9 = pnand %p197_p8, %p191_p5 }
  0x14   :  { %201 = shalt.err (!%p198_p9)
}
  0x15   :  { %s230_s20 = smov 256   ;;  %s231_s21 = smov 16  }
  0x16   :  { %32 = dma.hbm_to_vmem [thread:$0]  %s267_s1, 1024, %s27_s15, [#allocation6], %s230_s20, %s230_s20, %s231_s21  }
  0x17   :  { %222 = dma.done.wait [#allocation3], 128  }
  0x18   :  { %223 = vsyncadd [#allocation3], 4294967168 }
  0x19   :  { %224 = dma.done.wait [#allocation6], 1024  }
  0x1a   :  { %225 = vsyncadd [#allocation6], 4294966272  ;;  %v232_v0 = vmov 0.0   ;;  %v49_v1 = vld [vmem:[#allocation5 + $0x38] sm:$0xff]  ;;  %v48_v2 = vld [vmem:[#allocation5 + $0x30] sm:$0xff]  ;;  %vm62_vm0 = vcmask 261120   ;;  %v52_v10 = vlaneseq }
  0x1b   :  { %130 = vmatprep.mubr.f32.mxu0 %v232_v0  ;;  %v47_v3 = vld [vmem:[#allocation5 + $0x28] sm:$0xff]  ;;  %90 = vmatprep.subr.mxu0 %v49_v1  ;;  %v46_v4 = vld [vmem:[#allocation5 + $0x20] sm:$0xff]  ;;  %v45_v5 = vld [vmem:[#allocation5 + $0x18] sm:$0xff]  ;;  %s233_s24 = smov [#allocation7]  }
  0x1c   :  { %91 = vmatpush1.msra.mxu0 %v48_v2  ;;  %v44_v6 = vld [vmem:[#allocation5 + $0x10] sm:$0xff]  ;;  %v43_v7 = vld [vmem:[#allocation5 + $0x8] sm:$0xff]  ;;  %v42_v8 = vld [vmem:[#allocation5] sm:$0xff]  ;;  %v53_v11 = vshrl.u32 %v52_v10, 7  ;;  %s145_s25 = sshll.u32 %s233_s24, 4  ;;  %s146_s25 = int_to_ptr.vmem [resolvable:$true] %s145_s25 }
  0x1d   :  { %92 = vmatprep.subr.mxu0 %v47_v3  ;;  %v41_v9 = vld [vmem:[#allocation2] sm:$0xff]  ;;  %s202_s26 = scalar_lea.vmem %s146_s25, 256  ;;  %p207_p11 = scmp.lt.s32.totalorder %s146_s25, %s146_s25 }
  0x1e   :  { %93 = vmatpush1.msra.mxu0 %v46_v4  ;;  %v54_v12 = vsub.s32 0, %v53_v11  ;;  %v50_v13 = vld [vmem:[%s268_s2] sm:$0x3]  ;;  %v58_v14 = vsub.s32 1, %v53_v11  ;;  %p203_p10 = scmp.ne.s32.totalorder %s146_s25, %s202_s26  ;;  %p208_p12 = scmp.lt.s32.totalorder %s202_s26, %s202_s26 }
  0x1f   :  { %94 = vmatprep.subr.mxu0 %v45_v5 }
  0x20   :  { %95 = vmatpush1.msra.mxu0 %v44_v6  ;;  %v55_v15 = vrot.slane %v50_v13, %v54_v12  ;;  %v59_v16 = vrot.slane %v50_v13, %v58_v14  ;;  %p209_p13 = por %p208_p12, %p207_p11 }
  0x21   :  { %96 = vmatprep.subr.mxu0 %v43_v7 }
  0x22   :  { %97 = vmatpush1.msra.mxu0 %v42_v8  ;;  %p210_p0 = pnand %p209_p13, %p203_p10 }
  0x23   :  { %155 = vmatmul.mubr.msk.f32.vlgmr.msra.gmra.mxu0 %vm62_vm0, %v41_v9 }
  0xe3   :  { %v132_v17 = vpop.f32.mrf.mxu0 }
  0xe4   :  { %v133_v18 = vadd.f32 %v132_v17, %v55_v15 }
  0xe5   :  { %v134_v19 = vpop.f32.mrf.mxu0 }
  0xe6   :  { %137 = vst [vmem:[#allocation7] sm:$0xff] %v133_v18  ;;  %v135_v20 = vadd.f32 %v134_v19, %v59_v16 }
  0xe8   :  { %138 = vst [vmem:[#allocation7 + $0x8] sm:$0xff] %v135_v20 }
  0xe9   :  { %213 = shalt.err (!%p210_p0)
}
  0xea   :  { %148 = dma.vmem_to_hbm [thread:$0]  %s146_s25, 256, %s269_s3, [#allocation4]  }
  0xeb   :  { %226 = dma.done.wait [#allocation4], 256  }
  0xec   :  { %227 = vsyncadd [#allocation4], 4294967040 }
  0xed   :  { %152 = vsyncpa [#allocation3], 1 }
  0xee   :  { %153 = vsyncpa [#allocation6], 1 }
  0xef   :  { %154 = vsyncpa [#allocation4], 1 }

</bundles_post_ra>
